<compile_context>
chip_gen: v6e
topology: v6e:2x2x1
jax: 0.10.0
libtpu: 0.0.40
codegen_flags: <defaults>
</compile_context>

<pallas_src>
import functools
import math

import jax
import jax.numpy as jnp
from jax.experimental import pallas as pl
from jax.experimental.pallas import tpu as pltpu

# ---- hyper-parameters of OrthoHashLoss(__init__) defaults -------------------
CE = 1.0        # weight on cross-entropy term
S = 8.0         # cosine scale
M = 0.2         # cosine margin
QUAN = 0.0      # quantization weight (0 -> quantization term is exactly zero)

# constants for the analytic margin correction (computed at trace time)
_SM = S * M
_EXP_NEG_SM = math.exp(-_SM)

_MAX_TB = 1024      # batch-tile cap (rows)
_MAX_TC = 2048      # single-block class width cap; larger C gets class-tiled


def _vmem_limit_bytes():
    """~75% of physical VMEM (≈96 MiB on v5e/v6e, ≈48 MiB on v7x)."""
    try:
        cap = int(pltpu.get_tpu_info().vmem_capacity_bytes)
    except Exception:
        cap = 64 << 20          # conservative fallback (v7x per-core VMEM)
    return cap * 3 // 4


def _select_tiles(B, C, itemsize, block_b, block_c, vmem_budget):
    # class tile
    if block_c is not None:
        tc = min(block_c, C)
    elif C <= _MAX_TC:
        tc = C
    else:
        tc = 1024               # multiple of 128
    # batch tile: largest multiple of 128 (<= _MAX_TB) fitting the VMEM budget.
    # per-row bytes ≈ tc * (2*itemsize double-buffered input + ~3 f32 temps)
    if block_b is not None:
        tb = min(block_b, B)
    else:
        per_row = tc * (2 * itemsize + 12) + 64
        cap = max(128, (vmem_budget // per_row) // 128 * 128)
        tb = min(_MAX_TB, cap)
        if B <= tb:
            if B >= 256:
                # v7x megacore: keep >=2 batch tiles so both TensorCores work
                tb = max(128, (((B + 1) // 2) + 127) // 128 * 128)
            else:
                tb = B          # single tile; block == full extent
    return tb, tc


def _orthohash_ce_kernel(logits_ref, idx_ref, loss_ref, m_sc, l_sc, t_sc,
                         *, num_classes):
    """Online-softmax cosine-margin cross-entropy over one (tb, tc) tile.

    logits_ref : (tb, tc)  cosine logits (native dtype; cast to f32 here)
    idx_ref    : (tb, 1)   int32 target class index per row
    loss_ref   : (1, tb)   f32 per-sample loss (lane-dense; written at last c)
    m_sc/l_sc/t_sc : (tb,1) f32 scratch: running max, running sum(exp),
                     accumulated (unshifted) target logit.
    """
    c = pl.program_id(1)
    n_c = pl.num_programs(1)

    @pl.when(c == 0)
    def _():
        m_sc[...] = jnp.full_like(m_sc, -jnp.inf)
        l_sc[...] = jnp.zeros_like(l_sc)
        t_sc[...] = jnp.zeros_like(t_sc)

    z = S * logits_ref[...].astype(jnp.float32)              # (tb, tc)
    idx = idx_ref[...]                                        # (tb, 1) int32
    tb, tc = z.shape

    col = jax.lax.broadcasted_iota(jnp.int32, (tb, tc), 1) + c * tc
    onehot = col == idx                                       # (tb, tc)

    if num_classes % tc != 0:        # static: mask the partial class tile
        z = jnp.where(col < num_classes, z, -jnp.inf)

    tile_max = jnp.max(z, axis=1, keepdims=True)              # (tb, 1)
    m_new = jnp.maximum(m_sc[...], tile_max)
    alpha = jnp.exp(m_sc[...] - m_new)
    l_sc[...] = alpha * l_sc[...] + jnp.sum(jnp.exp(z - m_new),
                                            axis=1, keepdims=True)
    # exactly one (row, col) matches across all class tiles -> sum is exact z_t
    t_sc[...] = t_sc[...] + jnp.sum(jnp.where(onehot, z, 0.0),
                                    axis=1, keepdims=True)
    m_sc[...] = m_new

    @pl.when(c == n_c - 1)
    def _():
        m = m_sc[...]
        t = t_sc[...]
        # cosine margin applied analytically to the target column only:
        #   sum_j exp(margin_j - m) = l - exp(z_t - m) * (1 - exp(-s*m))
        #   loss = log(.) + m - (z_t - s*m)
        denom = l_sc[...] - jnp.exp(t - m) * (1.0 - _EXP_NEG_SM)
        loss = CE * (jnp.log(denom) + m - t + _SM)            # (tb, 1)
        loss_ref[0, :] = loss[:, 0]


def orthohash_loss(logits, code_logits, labels, onehot=True,
                   block_b=None, block_c=None):
    """Pallas OrthoHashLoss.forward(logits, code_logits, labels), defaults.

    Returns (loss: scalar f32, loss_batch: (B,) f32).
    Prefer onehot=False with integer labels: it skips a full B×C HBM pass.
    """
    del code_logits  # TODO(synk): only needed when quan != 0 (quantization term)
    B, C = logits.shape

    if onehot:
        # PyTorch-parity path (labels.argmax(1)).  This is an extra XLA pass
        # over the dense B×C one-hot in HBM -- pass int labels to avoid it.
        labels_idx = jnp.argmax(labels, axis=1).astype(jnp.int32)
    else:
        labels_idx = labels.astype(jnp.int32)
    labels_idx2d = labels_idx.reshape(B, 1)

    vmem_limit = _vmem_limit_bytes()
    tb, tc = _select_tiles(B, C, logits.dtype.itemsize, block_b, block_c,
                           vmem_limit)
    if B > tb:
        assert tb % 128 == 0, "batch tile must be a multiple of 128 when B > tb"
    if C > tc:
        assert tc % 128 == 0, "class tile must be a multiple of 128 when C > tc"
    n_b = pl.cdiv(B, tb)
    n_c = pl.cdiv(C, tc)

    kernel = functools.partial(_orthohash_ce_kernel, num_classes=C)

    # No jnp.pad: trailing partial blocks rely on Pallas block clipping.  Rows
    # are independent, so garbage in clipped rows only produces values in
    # output lanes that are never written back (OOB output stores are masked).
    loss_row = pl.pallas_call(
        kernel,
        grid=(n_b, n_c),
        in_specs=[
            pl.BlockSpec((tb, tc), lambda i, c: (i, c)),     # logits tile
            pl.BlockSpec((tb, 1), lambda i, c: (i, 0)),      # int32 label idx
        ],
        out_specs=pl.BlockSpec((1, tb), lambda i, c: (0, i)),  # lane-dense
        out_shape=jax.ShapeDtypeStruct((1, B), jnp.float32),
        scratch_shapes=[pltpu.VMEM((tb, 1), jnp.float32),    # running max
                        pltpu.VMEM((tb, 1), jnp.float32),    # running sum-exp
                        pltpu.VMEM((tb, 1), jnp.float32)],   # target logit
        compiler_params=pltpu.CompilerParams(
            dimension_semantics=("parallel", "arbitrary"),
            vmem_limit_bytes=vmem_limit),
    )(logits, labels_idx2d)

    loss_batch = loss_row[0]
    # quan == 0  ->  loss = ce * mean(ce_batch) = mean(loss_batch)
    loss = jnp.mean(loss_batch)
    return loss, loss_batch


def _reference(logits, labels_onehot):
    """Pure-JAX reference of the same forward pass (for sanity check)."""
    margin = S * (logits - M * labels_onehot)
    logp = jax.nn.log_softmax(margin, axis=1)
    per = -jnp.sum(labels_onehot * logp, axis=1)
    return jnp.mean(per), per


if __name__ == "__main__":
    key = jax.random.PRNGKey(0)

    def run_case(B, C, NBIT, onehot, block_b=None, block_c=None):
        k1, k2, k3 = jax.random.split(jax.random.fold_in(key, B * 1000 + C), 3)
        logits = jnp.tanh(jax.random.normal(k1, (B, C), dtype=jnp.float32))
        code_logits = jax.random.normal(k2, (B, NBIT), dtype=jnp.float32)
        label_idx = jax.random.randint(k3, (B,), 0, C)
        labels_onehot = jax.nn.one_hot(label_idx, C, dtype=jnp.float32)

        labels_in = labels_onehot if onehot else label_idx.astype(jnp.int32)
        loss, loss_batch = orthohash_loss(logits, code_logits, labels_in,
                                          onehot=onehot,
                                          block_b=block_b, block_c=block_c)
        jax.block_until_ready((loss, loss_batch))

        ref_loss, ref_batch = _reference(logits, labels_onehot)
        assert jnp.allclose(loss, ref_loss, atol=3e-5, rtol=3e-5), (loss, ref_loss)
        assert jnp.allclose(loss_batch, ref_batch, atol=3e-5, rtol=3e-5)

    # single-tile path (grid = (1, 1)), PyTorch-parity one-hot labels
    run_case(B=8, C=32, NBIT=16, onehot=True)
    # batch-tiled, non-divisible B (partial trailing block, NO pad), int labels
    run_case(B=200, C=32, NBIT=16, onehot=False, block_b=128)
    # class-tiled online-softmax path with a partial (masked) class tile
    run_case(B=16, C=200, NBIT=16, onehot=False, block_c=128)

    print("KERNEL_OK")
</pallas_src>

<mosaic_0001>
module attributes {stable_mosaic.version = 11 : i64} {
  func.func @_orthohash_ce_kernel(%arg0: i32, %arg1: i32, %arg2: memref<8x32xf32, #tpu.memory_space<vmem>>, %arg3: memref<8x1xi32, #tpu.memory_space<vmem>>, %arg4: memref<1x8xf32, #tpu.memory_space<vmem>>, %arg5: memref<8x1xf32, #tpu.memory_space<vmem>>, %arg6: memref<8x1xf32, #tpu.memory_space<vmem>>, %arg7: memref<8x1xf32, #tpu.memory_space<vmem>>) attributes {dimension_semantics = [#tpu.dimension_semantics<parallel>, #tpu.dimension_semantics<arbitrary>], iteration_bounds = array<i64: 1, 1>, scalar_prefetch = 0 : i64, scratch_operands = 3 : i64, tpu.core_type = #tpu.core_type<tc>, window_params = [{transform_indices = @transform_0, window_bounds = array<i64: 8, 32>}, {transform_indices = @transform_1, window_bounds = array<i64: 8, 1>}, {transform_indices = @transform_2, window_bounds = array<i64: 1, 8>}]} {
    %c0_i32 = arith.constant 0 : i32
    %0 = arith.cmpi eq, %arg1, %c0_i32 : i32
    %1 = arith.extui %0 : i1 to i32
    %c0_i32_0 = arith.constant 0 : i32
    %2 = arith.cmpi ne, %1, %c0_i32_0 : i32
    scf.if %2 {
      %cst_24 = arith.constant 0xFF800000 : f32
      %40 = vector.broadcast %cst_24 : f32 to vector<8x1xf32>
      %c0_25 = arith.constant 0 : index
      %c0_26 = arith.constant 0 : index
      %41 = vector.load %arg5[%c0_25, %c0_26] : memref<8x1xf32, #tpu.memory_space<vmem>>, vector<8x1xf32>
      tpu.vector_store %arg5[%c0_25, %c0_26], %40 {strides = array<i32>} : memref<8x1xf32, #tpu.memory_space<vmem>>, vector<8x1xf32>,
      %cst_27 = arith.constant 0.000000e+00 : f32
      %42 = vector.broadcast %cst_27 : f32 to vector<8x1xf32>
      %c0_28 = arith.constant 0 : index
      %c0_29 = arith.constant 0 : index
      %43 = vector.load %arg6[%c0_28, %c0_29] : memref<8x1xf32, #tpu.memory_space<vmem>>, vector<8x1xf32>
      tpu.vector_store %arg6[%c0_28, %c0_29], %42 {strides = array<i32>} : memref<8x1xf32, #tpu.memory_space<vmem>>, vector<8x1xf32>,
      %cst_30 = arith.constant 0.000000e+00 : f32
      %44 = vector.broadcast %cst_30 : f32 to vector<8x1xf32>
      %c0_31 = arith.constant 0 : index
      %c0_32 = arith.constant 0 : index
      %45 = vector.load %arg7[%c0_31, %c0_32] : memref<8x1xf32, #tpu.memory_space<vmem>>, vector<8x1xf32>
      tpu.vector_store %arg7[%c0_31, %c0_32], %44 {strides = array<i32>} : memref<8x1xf32, #tpu.memory_space<vmem>>, vector<8x1xf32>,
    } else {
    }
    %c0 = arith.constant 0 : index
    %c0_1 = arith.constant 0 : index
    %3 = vector.load %arg2[%c0, %c0_1] : memref<8x32xf32, #tpu.memory_space<vmem>>, vector<8x32xf32>
    %cst = arith.constant 8.000000e+00 : f32
    %4 = vector.broadcast %cst : f32 to vector<8x32xf32>
    %5 = arith.mulf %4, %3 : vector<8x32xf32>
    %c0_2 = arith.constant 0 : index
    %c0_3 = arith.constant 0 : index
    %6 = vector.load %arg3[%c0_2, %c0_3] : memref<8x1xi32, #tpu.memory_space<vmem>>, vector<8x1xi32>
    %7 = tpu.iota {dimensions = array<i32: 1>} : vector<8x32xi32>
    %c32_i32 = arith.constant 32 : i32
    %8 = arith.muli %arg1, %c32_i32 : i32
    %9 = vector.broadcast %8 : i32 to vector<8x32xi32>
    %10 = arith.addi %7, %9 : vector<8x32xi32>
    %11 = vector.broadcast %6 : vector<8x1xi32> to vector<8x32xi32>
    %12 = arith.cmpi eq, %10, %11 : vector<8x32xi32>
    %cst_4 = arith.constant dense<0xFF800000> : vector<8xf32>
    %13 = vector.multi_reduction <maximumf>, %5, %cst_4 [1] : vector<8x32xf32> to vector<8xf32>
    %14 = vector.shape_cast %13 : vector<8xf32> to vector<8x1xf32>
    %c0_5 = arith.constant 0 : index
    %c0_6 = arith.constant 0 : index
    %15 = vector.load %arg5[%c0_5, %c0_6] : memref<8x1xf32, #tpu.memory_space<vmem>>, vector<8x1xf32>
    %16 = arith.maximumf %15, %14 : vector<8x1xf32>
    %c0_7 = arith.constant 0 : index
    %c0_8 = arith.constant 0 : index
    %17 = vector.load %arg5[%c0_7, %c0_8] : memref<8x1xf32, #tpu.memory_space<vmem>>, vector<8x1xf32>
    %18 = arith.subf %17, %16 : vector<8x1xf32>
    %19 = math.exp %18 : vector<8x1xf32>
    %c0_9 = arith.constant 0 : index
    %c0_10 = arith.constant 0 : index
    %20 = vector.load %arg6[%c0_9, %c0_10] : memref<8x1xf32, #tpu.memory_space<vmem>>, vector<8x1xf32>
    %21 = arith.mulf %19, %20 : vector<8x1xf32>
    %22 = vector.broadcast %16 : vector<8x1xf32> to vector<8x32xf32>
    %23 = arith.subf %5, %22 : vector<8x32xf32>
    %24 = math.exp %23 : vector<8x32xf32>
    %cst_11 = arith.constant dense<0.000000e+00> : vector<8xf32>
    %25 = vector.multi_reduction <add>, %24, %cst_11 [1] : vector<8x32xf32> to vector<8xf32>
    %26 = vector.shape_cast %25 : vector<8xf32> to vector<8x1xf32>
    %27 = arith.addf %21, %26 : vector<8x1xf32>
    %c0_12 = arith.constant 0 : index
    %c0_13 = arith.constant 0 : index
    %28 = vector.load %arg6[%c0_12, %c0_13] : memref<8x1xf32, #tpu.memory_space<vmem>>, vector<8x1xf32>
    tpu.vector_store %arg6[%c0_12, %c0_13], %27 {strides = array<i32>} : memref<8x1xf32, #tpu.memory_space<vmem>>, vector<8x1xf32>,
    %c0_14 = arith.constant 0 : index
    %c0_15 = arith.constant 0 : index
    %29 = vector.load %arg7[%c0_14, %c0_15] : memref<8x1xf32, #tpu.memory_space<vmem>>, vector<8x1xf32>
    %cst_16 = arith.constant 0.000000e+00 : f32
    %30 = vector.broadcast %cst_16 : f32 to vector<8x32xf32>
    %31 = arith.select %12, %5, %30 : vector<8x32xi1>, vector<8x32xf32>
    %cst_17 = arith.constant dense<0.000000e+00> : vector<8xf32>
    %32 = vector.multi_reduction <add>, %31, %cst_17 [1] : vector<8x32xf32> to vector<8xf32>
    %33 = vector.shape_cast %32 : vector<8xf32> to vector<8x1xf32>
    %34 = arith.addf %29, %33 : vector<8x1xf32>
    %c0_18 = arith.constant 0 : index
    %c0_19 = arith.constant 0 : index
    %35 = vector.load %arg7[%c0_18, %c0_19] : memref<8x1xf32, #tpu.memory_space<vmem>>, vector<8x1xf32>
    tpu.vector_store %arg7[%c0_18, %c0_19], %34 {strides = array<i32>} : memref<8x1xf32, #tpu.memory_space<vmem>>, vector<8x1xf32>,
    %c0_20 = arith.constant 0 : index
    %c0_21 = arith.constant 0 : index
    %36 = vector.load %arg5[%c0_20, %c0_21] : memref<8x1xf32, #tpu.memory_space<vmem>>, vector<8x1xf32>
    tpu.vector_store %arg5[%c0_20, %c0_21], %16 {strides = array<i32>} : memref<8x1xf32, #tpu.memory_space<vmem>>, vector<8x1xf32>,
    %c0_i32_22 = arith.constant 0 : i32
    %37 = arith.cmpi eq, %arg1, %c0_i32_22 : i32
    %38 = arith.extui %37 : i1 to i32
    %c0_i32_23 = arith.constant 0 : i32
    %39 = arith.cmpi ne, %38, %c0_i32_23 : i32
    scf.if %39 {
      %c0_24 = arith.constant 0 : index
      %c0_25 = arith.constant 0 : index
      %40 = vector.load %arg5[%c0_24, %c0_25] : memref<8x1xf32, #tpu.memory_space<vmem>>, vector<8x1xf32>
      %c0_26 = arith.constant 0 : index
      %c0_27 = arith.constant 0 : index
      %41 = vector.load %arg7[%c0_26, %c0_27] : memref<8x1xf32, #tpu.memory_space<vmem>>, vector<8x1xf32>
      %c0_28 = arith.constant 0 : index
      %c0_29 = arith.constant 0 : index
      %42 = vector.load %arg6[%c0_28, %c0_29] : memref<8x1xf32, #tpu.memory_space<vmem>>, vector<8x1xf32>
      %43 = arith.subf %41, %40 : vector<8x1xf32>
      %44 = math.exp %43 : vector<8x1xf32>
      %cst_30 = arith.constant 0.798103511 : f32
      %45 = vector.broadcast %cst_30 : f32 to vector<8x1xf32>
      %46 = arith.mulf %44, %45 : vector<8x1xf32>
      %47 = arith.subf %42, %46 : vector<8x1xf32>
      %48 = math.log %47 : vector<8x1xf32>
      %49 = arith.addf %48, %40 : vector<8x1xf32>
      %50 = arith.subf %49, %41 : vector<8x1xf32>
      %cst_31 = arith.constant 1.600000e+00 : f32
      %51 = vector.broadcast %cst_31 : f32 to vector<8x1xf32>
      %52 = arith.addf %50, %51 : vector<8x1xf32>
      %cst_32 = arith.constant 1.000000e+00 : f32
      %53 = vector.broadcast %cst_32 : f32 to vector<8x1xf32>
      %54 = arith.mulf %53, %52 : vector<8x1xf32>
      %55 = vector.shape_cast %54 : vector<8x1xf32> to vector<8xf32>
      %c0_33 = arith.constant 0 : index
      %c0_34 = arith.constant 0 : index
      %56 = vector.load %arg4[%c0_33, %c0_34] : memref<1x8xf32, #tpu.memory_space<vmem>>, vector<1x8xf32>
      %57 = vector.shape_cast %56 : vector<1x8xf32> to vector<8xf32>
      %58 = vector.shape_cast %55 : vector<8xf32> to vector<1x8xf32>
      tpu.vector_store %arg4[%c0_33, %c0_34], %58 {strides = array<i32>} : memref<1x8xf32, #tpu.memory_space<vmem>>, vector<1x8xf32>,
    } else {
    }
    return
  }
  func.func @transform_0(%arg0: i32, %arg1: i32) -> (i32, i32) {
    %c0_i32 = arith.constant 0 : i32
    return %arg0, %arg1 : i32, i32
  }
  func.func @transform_1(%arg0: i32, %arg1: i32) -> (i32, i32) {
    %c0_i32 = arith.constant 0 : i32
    %c0_i32_0 = arith.constant 0 : i32
    return %arg0, %c0_i32 : i32, i32
  }
  func.func @transform_2(%arg0: i32, %arg1: i32) -> (i32, i32) {
    %c0_i32 = arith.constant 0 : i32
    %c0_i32_0 = arith.constant 0 : i32
    return %c0_i32, %arg0 : i32, i32
  }
}

</mosaic_0001>

<bundles_post_ra>
// kernel: tpu_custom_call.1
= control target key start
LH: loop header
LB: loop body
LE: loop exit
PB: predicated region body
PF: predicated region fallthrough
CT: control target
= control target key end

     0   :  { %vm32_vm0 = vcmask 261120   ;;  %s179_s0 = inlined_call_operand.vmem [shape: f32[8,32], index: 0, kind: input, shape index: {}]   ;;  %s180_s1 = inlined_call_operand.vmem [shape: s32[8,1], index: 1, kind: input, shape index: {}]   ;;  %s181_s2 = inlined_call_operand.hbm [shape: f32[1,8], index: 2, kind: output, shape index: {}]  }
   0x1   :  { %v20_v0 = vld [vmem:[%s179_s0] sm:$0xff] }
   0x2   :  { %7 = vsyncpa [#allocation6], 0  ;;  %v21_v1 = vmul.f32 8.0, %v20_v0  ;;  %v142_v2 = vmov 0   ;;  %vm16_vm1 = vcmask 7168   ;;  %v143_v4 = vmov -inf  }
   0x3   :  { %110 = vset.pattern.permute.xlu0 %v142_v2  ;;  %111 = vset.pattern.permute.xlu1 %v142_v2  ;;  %17 = vst.msk [vmem:[#allocation2] sm:$0xff] %vm16_vm1, %v143_v4  ;;  %v22_v5 = vld [vmem:[%s180_s1] sm:$0xff]  ;;  %v144_v6 = vmov 0.0   ;;  %v23_v11 = vlaneseq  ;;  %s145_s0 = smov [#allocation5]   ;;  %vm90_vm3 = vcmask 57344  }
   0x4   :  { %v33_v3 = vsel %vm32_vm0, %v21_v1, -inf  ;;  %19 = vst.msk [vmem:[#allocation4] sm:$0xff] %vm16_vm1, %v144_v6  ;;  %18 = vst.msk [vmem:[#allocation3] sm:$0xff] %vm16_vm1, %v144_v6  ;;  %s98_s1 = sshll.u32 %s145_s0, 4  ;;  %s99_s1 = int_to_ptr.vmem [resolvable:$true] %s98_s1 }
   0x5   :  { %34 = vmax.xlane.f32.xlu0 %v33_v3  ;;  %v24_v12 = vand.u32 127, %v23_v11  ;;  %v86_v43 = vshrl.u32 %v23_v11, 7  ;;  %s120_s13 = scalar_lea.vmem %s99_s1, 16  ;;  %s124_s14 = scalar_lea.vmem %s99_s1, 32 }
   0x6   :  { %p121_p0 = scmp.ne.s32.totalorder %s99_s1, %s120_s13  ;;  %p125_p1 = scmp.lt.s32.totalorder %s99_s1, %s99_s1 }
   0x7   :  { %v87_v44 = vsub.s32 %v24_v12, %v86_v43  ;;  %p126_p2 = scmp.lt.s32.totalorder %s124_s14, %s120_s13 }
   0x9   :  { %p127_p3 = por %p126_p2, %p125_p1 }
   0xa   :  { %v36_v7 = vld [vmem:[#allocation2] sm:$0xff] }
   0xb   :  { %v57_v21 = vld [vmem:[#allocation4] sm:$0xff]  ;;  %v41_v30 = vld [vmem:[#allocation3] sm:$0xff]  ;;  %p128_p4 = pnand %p127_p3, %p121_p0 }
  0x1b   :  { %29 = vperm.xlu0 %110, %v22_v5  }
  0x8e   :  { %v35_v8 = vpop.xlane.xlu0 %34 }
  0x8f   :  { %v37_v9 = vmax.f32 %v36_v7, %v35_v8 }
  0x91   :  { %v38_v10 = vsub.f32 %v36_v7, %v37_v9  ;;  %64 = vst.msk [vmem:[#allocation2] sm:$0xff] %vm16_vm1, %v37_v9  ;;  %45 = vperm.xlu1 %111, %v37_v9  }
  0x93   :  { %v39_v24 = vmul.f32 1.442695, %v38_v10 }
  0x96   :  { %v30_v13 = vpop.permute.xlu0 %29 }
  0x97   :  { %vm31_vm2 = vcmp.eq.s32.totalorder %v24_v12, %v30_v13 }
  0x98   :  { %v58_v14 = vsel %vm31_vm2, %v21_v1, 0.0  ;;  %v68_v26 = vld [vmem:[#allocation2] sm:$0xff] }
  0x99   :  { %v59_v15 = vsel %vm32_vm0, %v58_v14, 0.0 }
  0xb5   :  { %60 = vadd.xlane.f32.xlu1 %v59_v15 }
 0x10c   :  { %v46_v16 = vpop.permute.xlu1 %45 }
 0x10d   :  { %v48_v17 = vsub.f32 %v21_v1, %v46_v16 }
 0x10f   :  { %v49_v18 = vmul.f32 1.442695, %v48_v17 }
 0x111   :  { %112 = vpow2.f32 %v49_v18 }
 0x112   :  { %114 = vpow2.f32 %v39_v24 }
 0x11e   :  { %v113_v19 = vpop.eup %112 }
 0x11f   :  { %v51_v20 = vsel %vm32_vm0, %v113_v19, 0.0  ;;  %v115_v29 = vpop.eup %114 }
 0x120   :  { %52 = vadd.xlane.f32.xlu1 %v51_v20  ;;  %v42_v31 = vmul.f32 %v115_v29, %v41_v30 }
 0x13e   :  { %v61_v22 = vpop.xlane.xlu1 %60 }
 0x13f   :  { %v62_v23 = vadd.f32 %v61_v22, %v57_v21 }
 0x141   :  { %63 = vst.msk [vmem:[#allocation4] sm:$0xff] %vm16_vm1, %v62_v23 }
 0x148   :  { %v69_v25 = vld [vmem:[#allocation4] sm:$0xff] }
 0x149   :  { %v71_v27 = vsub.f32 %v69_v25, %v68_v26 }
 0x14b   :  { %v72_v28 = vmul.f32 1.442695, %v71_v27 }
 0x14d   :  { %116 = vpow2.f32 %v72_v28 }
 0x15a   :  { %v117_v34 = vpop.eup %116 }
 0x15b   :  { %v74_v35 = vmul.f32 0.7981035, %v117_v34 }
 0x1a9   :  { %v53_v32 = vpop.xlane.xlu1 %52 }
 0x1aa   :  { %v54_v33 = vadd.f32 %v53_v32, %v42_v31 }
 0x1ac   :  { %56 = vst.msk [vmem:[#allocation3] sm:$0xff] %vm16_vm1, %v54_v33 }
 0x1b3   :  { %v70_v36 = vld [vmem:[#allocation3] sm:$0xff] }
 0x1b4   :  { %v75_v37 = vsub.f32 %v70_v36, %v74_v35 }
 0x1b6   :  { %118 = vlog2.f32 %v75_v37 }
 0x1c3   :  { %v119_v38 = vpop.eup %118 }
 0x1c4   :  { %v77_v39 = vmul.f32 0.6931472, %v119_v38 }
 0x1c6   :  { %v78_v40 = vadd.f32 %v77_v39, %v68_v26 }
 0x1c8   :  { %v79_v41 = vsub.f32 %v78_v40, %v69_v25 }
 0x1ca   :  { %v80_v42 = vadd.f32 1.6, %v79_v41 }
 0x1cc   :  { %83 = vperm.xlu1 %111, %v80_v42  }
 0x247   :  { %v84_v45 = vpop.permute.xlu1 %83 }
 0x248   :  { %v88_v46 = vrot.slane %v84_v45, %v87_v44 }
 0x24a   :  { %91 = vst.msk [vmem:[#allocation5] sm:$0x1] %vm90_vm3, %v88_v46 }
 0x24b   :  { %131 = shalt.err (!%p128_p4)
}
 0x24c   :  { %101 = dma.vmem_to_hbm [thread:$0]  %s99_s1, 16, %s181_s2, [#allocation6]  }
 0x24d   :  { %140 = dma.done.wait [#allocation6], 16  }
 0x24e   :  { %141 = vsyncadd [#allocation6], 4294967280 }
 0x24f   :  { %105 = vsyncpa [#allocation6], 1 }

</bundles_post_ra>
